<compile_context>
chip_gen: v5e
topology: v5e:2x2
jax: 0.10.0
libtpu: 0.0.40
codegen_flags: <defaults>
</compile_context>

<pallas_src>
import functools

import jax
import jax.numpy as jnp
from jax.experimental import pallas as pl
from jax.experimental.pallas import tpu as pltpu

_EPS = 1e-5


def _net_kernel(x_ref, w1_ref, b1_ref, gamma_ref, beta_ref, w2_ref, b2_ref,
                o_ref, sum_sc, sumsq_sc, weff_sc, beff_sc, *, inv_b):
    phase = pl.program_id(0)   # 0: accumulate batch stats, 1: fold BN + project
    tile = pl.program_id(1)    # batch-tile index

    @pl.when(phase == 0)
    def _accumulate():
        @pl.when(tile == 0)
        def _init():
            sum_sc[...] = jnp.zeros_like(sum_sc)
            sumsq_sc[...] = jnp.zeros_like(sumsq_sc)

        # layer1 on this batch tile; only needed to form the batch statistics.
        h = jnp.dot(x_ref[...], w1_ref[...],
                    preferred_element_type=jnp.float32) + b1_ref[...]    # (TM, 50)
        # Two independent sublane reductions -> overlapping XLU pushes.
        sum_sc[...] += jnp.sum(h, axis=0, keepdims=True)
        sumsq_sc[...] += jnp.sum(h * h, axis=0, keepdims=True)

    @pl.when(phase == 1)
    def _apply():
        @pl.when(tile == 0)
        def _finalize_stats():
            mean = sum_sc[...] * inv_b
            # Clamp guards against tiny negative values from cancellation.
            var = jnp.maximum(sumsq_sc[...] * inv_b - mean * mean, 0.0)
            inv_std = jax.lax.rsqrt(var + _EPS)
            scale = inv_std * gamma_ref[...]          # (1, 50)
            shift = beta_ref[...] - mean * scale      # (1, 50)
            # Fold BN all the way through layer2 once:
            #   out = x @ [(W1*scale) @ W2] + [(b1*scale + shift) @ W2 + b2]
            weff_sc[...] = jnp.dot(w1_ref[...] * scale, w2_ref[...],
                                   preferred_element_type=jnp.float32)   # (5, 2)
            beff_sc[...] = (jnp.dot(b1_ref[...] * scale + shift, w2_ref[...],
                                    preferred_element_type=jnp.float32)
                            + b2_ref[...])                               # (1, 2)

        # Per-tile phase-1 body: one tiny (TM,5)x(5,2) matmul + bias.
        o_ref[...] = (jnp.dot(x_ref[...], weff_sc[...],
                              preferred_element_type=jnp.float32) + beff_sc[...])


def _pick_tile(b):
    # Biggest sublane-aligned tile that divides B.  Candidates are sized so the
    # double-buffered x/out blocks (~2 KiB/row after 128-lane padding) stay
    # well inside the 32 MiB scoped-VMEM limit set below (tm=8192 -> ~16 MiB).
    for cand in (8192, 4096, 2048, 1024, 512, 256, 128, 64, 32, 16, 8):
        if b % cand == 0:
            return cand
    return b   # whole batch: block == full array dim, always legal


def net_forward(x, w1, b1, gamma, beta, w2, b2, *, tm=None):
    B, in_f = x.shape
    hid = w1.shape[1]
    out_f = w2.shape[1]

    if tm is None:
        tm = _pick_tile(B)
    assert B % tm == 0, "batch must be a multiple of the batch tile"
    assert tm == B or tm % 8 == 0, "batch tile must be sublane-aligned"
    nt = B // tm

    kernel = functools.partial(_net_kernel, inv_b=1.0 / B)

    def const(a):  # whole-array block, constant index -> stays VMEM-resident
        return pl.BlockSpec(a.shape, lambda p, i: (0,) * a.ndim)

    return pl.pallas_call(
        kernel,
        out_shape=jax.ShapeDtypeStruct((B, out_f), jnp.float32),
        grid_spec=pltpu.PrefetchScalarGridSpec(
            num_scalar_prefetch=0,
            grid=(2, nt),                                        # (phase, batch tile)
            in_specs=[
                pl.BlockSpec((tm, in_f), lambda p, i: (i, 0)),   # x: tiled over batch
                const(w1), const(b1), const(gamma), const(beta), const(w2), const(b2),
            ],
            # Phase-aware: all phase-0 steps pin output block 0, so no
            # never-written output tile is ever flushed to HBM; phase 1 then
            # walks the real output tiles 0..nt-1.
            out_specs=pl.BlockSpec((tm, out_f), lambda p, i: (p * i, 0)),
            scratch_shapes=[
                pltpu.VMEM((1, hid), jnp.float32),        # sum(h)
                pltpu.VMEM((1, hid), jnp.float32),        # sum(h*h)
                pltpu.VMEM((in_f, out_f), jnp.float32),   # W_eff = (W1*scale)@W2
                pltpu.VMEM((1, out_f), jnp.float32),      # b_eff
            ]),
        # BN stats are global over the batch and the scratch carries state
        # across steps, so neither grid axis may be sharded across TensorCores.
        compiler_params=pltpu.CompilerParams(
            dimension_semantics=("arbitrary", "arbitrary"),
            vmem_limit_bytes=32 * 1024 * 1024),
    )(x, w1, b1, gamma, beta, w2, b2)


def init_params(key):
    """Deterministic params matching the PyTorch module's shapes."""
    k1, k2, k3, k4 = jax.random.split(key, 4)
    in_f, hid, out_f = 5, 50, 2
    lim1 = 1.0 / jnp.sqrt(in_f)
    lim2 = 1.0 / jnp.sqrt(hid)
    w1 = jax.random.uniform(k1, (in_f, hid), jnp.float32, -lim1, lim1)   # (5, 50)
    b1 = jax.random.uniform(k2, (1, hid), jnp.float32, -lim1, lim1)      # (1, 50)
    w2 = jax.random.uniform(k3, (hid, out_f), jnp.float32, -lim2, lim2)  # (50, 2)
    b2 = jax.random.uniform(k4, (1, out_f), jnp.float32, -lim2, lim2)    # (1, 2)
    gamma = jnp.ones((1, hid), jnp.float32)                              # BN weight
    beta = jnp.zeros((1, hid), jnp.float32)                              # BN bias
    return w1, b1, gamma, beta, w2, b2


def reference(x, w1, b1, gamma, beta, w2, b2):
    h = x @ w1 + b1
    mean = h.mean(axis=0, keepdims=True)
    var = ((h - mean) ** 2).mean(axis=0, keepdims=True)   # biased, training-mode BN
    hn = (h - mean) / jnp.sqrt(var + _EPS) * gamma + beta
    return hn @ w2 + b2


if __name__ == "__main__":
    key = jax.random.PRNGKey(0)
    kx, kp = jax.random.split(key)
    params = init_params(kp)

    # Multi-tile case: exercises the 2-phase grid, the cross-tile stats
    # accumulator and the phase-aware output index_map.  grid = (2, 4).
    x_big = jax.random.normal(kx, (64, 5), jnp.float32)
    out_big = jax.block_until_ready(net_forward(x_big, *params, tm=16))
    ref_big = reference(x_big, *params)
    assert out_big.shape == (64, 2)
    assert jnp.allclose(out_big, ref_big, atol=1e-4, rtol=1e-4), \
        float(jnp.max(jnp.abs(out_big - ref_big)))

    # Default tile selection (tm = 64 -> single tile, grid (2, 1)).
    out_def = jax.block_until_ready(net_forward(x_big, *params))
    assert jnp.allclose(out_def, ref_big, atol=1e-4, rtol=1e-4), \
        float(jnp.max(jnp.abs(out_def - ref_big)))

    # Small batch (tile == whole batch).
    x_small = jax.random.normal(jax.random.fold_in(kx, 1), (8, 5), jnp.float32)
    out_small = jax.block_until_ready(net_forward(x_small, *params))
    ref_small = reference(x_small, *params)
    assert out_small.shape == (8, 2)
    assert jnp.allclose(out_small, ref_small, atol=1e-4, rtol=1e-4), \
        float(jnp.max(jnp.abs(out_small - ref_small)))

    print("KERNEL_OK")
</pallas_src>

<mosaic_0001>
module attributes {stable_mosaic.version = 11 : i64} {
  func.func @_net_kernel(%arg0: i32, %arg1: i32, %arg2: memref<16x5xf32, #tpu.memory_space<vmem>>, %arg3: memref<5x50xf32, #tpu.memory_space<vmem>>, %arg4: memref<1x50xf32, #tpu.memory_space<vmem>>, %arg5: memref<1x50xf32, #tpu.memory_space<vmem>>, %arg6: memref<1x50xf32, #tpu.memory_space<vmem>>, %arg7: memref<50x2xf32, #tpu.memory_space<vmem>>, %arg8: memref<1x2xf32, #tpu.memory_space<vmem>>, %arg9: memref<16x2xf32, #tpu.memory_space<vmem>>, %arg10: memref<1x50xf32, #tpu.memory_space<vmem>>, %arg11: memref<1x50xf32, #tpu.memory_space<vmem>>, %arg12: memref<5x2xf32, #tpu.memory_space<vmem>>, %arg13: memref<1x2xf32, #tpu.memory_space<vmem>>) attributes {dimension_semantics = [#tpu.dimension_semantics<arbitrary>, #tpu.dimension_semantics<arbitrary>], iteration_bounds = array<i64: 2, 4>, scalar_prefetch = 0 : i64, scratch_operands = 4 : i64, tpu.core_type = #tpu.core_type<tc>, window_params = [{transform_indices = @transform_0, window_bounds = array<i64: 16, 5>}, {pipeline_mode = #tpu.pipeline_mode<synchronous>, transform_indices = @transform_1, window_bounds = array<i64: 5, 50>}, {pipeline_mode = #tpu.pipeline_mode<synchronous>, transform_indices = @transform_2, window_bounds = array<i64: 1, 50>}, {pipeline_mode = #tpu.pipeline_mode<synchronous>, transform_indices = @transform_3, window_bounds = array<i64: 1, 50>}, {pipeline_mode = #tpu.pipeline_mode<synchronous>, transform_indices = @transform_4, window_bounds = array<i64: 1, 50>}, {pipeline_mode = #tpu.pipeline_mode<synchronous>, transform_indices = @transform_5, window_bounds = array<i64: 50, 2>}, {pipeline_mode = #tpu.pipeline_mode<synchronous>, transform_indices = @transform_6, window_bounds = array<i64: 1, 2>}, {transform_indices = @transform_7, window_bounds = array<i64: 16, 2>}]} {
    %c0_i32 = arith.constant 0 : i32
    %0 = arith.cmpi eq, %arg0, %c0_i32 : i32
    %1 = arith.extui %0 : i1 to i32
    %c0_i32_0 = arith.constant 0 : i32
    %2 = arith.cmpi ne, %1, %c0_i32_0 : i32
    scf.if %2 {
      %c0_i32_2 = arith.constant 0 : i32
      %6 = arith.cmpi eq, %arg1, %c0_i32_2 : i32
      %7 = arith.extui %6 : i1 to i32
      %c0_i32_3 = arith.constant 0 : i32
      %8 = arith.cmpi ne, %7, %c0_i32_3 : i32
      scf.if %8 {
        %cst_19 = arith.constant 0.000000e+00 : f32
        %26 = vector.broadcast %cst_19 : f32 to vector<1x50xf32>
        %c0_20 = arith.constant 0 : index
        %c0_21 = arith.constant 0 : index
        %27 = vector.load %arg10[%c0_20, %c0_21] : memref<1x50xf32, #tpu.memory_space<vmem>>, vector<1x50xf32>
        tpu.vector_store %arg10[%c0_20, %c0_21], %26 {strides = array<i32>} : memref<1x50xf32, #tpu.memory_space<vmem>>, vector<1x50xf32>,
        %cst_22 = arith.constant 0.000000e+00 : f32
        %28 = vector.broadcast %cst_22 : f32 to vector<1x50xf32>
        %c0_23 = arith.constant 0 : index
        %c0_24 = arith.constant 0 : index
        %29 = vector.load %arg11[%c0_23, %c0_24] : memref<1x50xf32, #tpu.memory_space<vmem>>, vector<1x50xf32>
        tpu.vector_store %arg11[%c0_23, %c0_24], %28 {strides = array<i32>} : memref<1x50xf32, #tpu.memory_space<vmem>>, vector<1x50xf32>,
      } else {
      }
      %c0 = arith.constant 0 : index
      %c0_4 = arith.constant 0 : index
      %9 = vector.load %arg2[%c0, %c0_4] : memref<16x5xf32, #tpu.memory_space<vmem>>, vector<16x5xf32>
      %c0_5 = arith.constant 0 : index
      %c0_6 = arith.constant 0 : index
      %10 = vector.load %arg3[%c0_5, %c0_6] : memref<5x50xf32, #tpu.memory_space<vmem>>, vector<5x50xf32>
      %cst = arith.constant dense<0.000000e+00> : vector<16x50xf32>
      %11 = tpu.matmul %9, %10, %cst {dimension_numbers = #tpu.dot_dimension_numbers<[1], [0], [0], [1], [0, 0, 1, 1], [], []>} : vector<16x5xf32>, vector<5x50xf32>, vector<16x50xf32> -> vector<16x50xf32>
      %c0_7 = arith.constant 0 : index
      %c0_8 = arith.constant 0 : index
      %12 = vector.load %arg4[%c0_7, %c0_8] : memref<1x50xf32, #tpu.memory_space<vmem>>, vector<1x50xf32>
      %13 = vector.broadcast %12 : vector<1x50xf32> to vector<16x50xf32>
      %14 = arith.addf %11, %13 : vector<16x50xf32>
      %c0_9 = arith.constant 0 : index
      %c0_10 = arith.constant 0 : index
      %15 = vector.load %arg10[%c0_9, %c0_10] : memref<1x50xf32, #tpu.memory_space<vmem>>, vector<1x50xf32>
      %cst_11 = arith.constant dense<0.000000e+00> : vector<50xf32>
      %16 = vector.multi_reduction <add>, %14, %cst_11 [0] : vector<16x50xf32> to vector<50xf32>
      %17 = vector.shape_cast %16 : vector<50xf32> to vector<1x50xf32>
      %18 = arith.addf %15, %17 : vector<1x50xf32>
      %c0_12 = arith.constant 0 : index
      %c0_13 = arith.constant 0 : index
      %19 = vector.load %arg10[%c0_12, %c0_13] : memref<1x50xf32, #tpu.memory_space<vmem>>, vector<1x50xf32>
      tpu.vector_store %arg10[%c0_12, %c0_13], %18 {strides = array<i32>} : memref<1x50xf32, #tpu.memory_space<vmem>>, vector<1x50xf32>,
      %c0_14 = arith.constant 0 : index
      %c0_15 = arith.constant 0 : index
      %20 = vector.load %arg11[%c0_14, %c0_15] : memref<1x50xf32, #tpu.memory_space<vmem>>, vector<1x50xf32>
      %21 = arith.mulf %14, %14 : vector<16x50xf32>
      %cst_16 = arith.constant dense<0.000000e+00> : vector<50xf32>
      %22 = vector.multi_reduction <add>, %21, %cst_16 [0] : vector<16x50xf32> to vector<50xf32>
      %23 = vector.shape_cast %22 : vector<50xf32> to vector<1x50xf32>
      %24 = arith.addf %20, %23 : vector<1x50xf32>
      %c0_17 = arith.constant 0 : index
      %c0_18 = arith.constant 0 : index
      %25 = vector.load %arg11[%c0_17, %c0_18] : memref<1x50xf32, #tpu.memory_space<vmem>>, vector<1x50xf32>
      tpu.vector_store %arg11[%c0_17, %c0_18], %24 {strides = array<i32>} : memref<1x50xf32, #tpu.memory_space<vmem>>, vector<1x50xf32>,
    } else {
    }
    %c1_i32 = arith.constant 1 : i32
    %3 = arith.cmpi eq, %arg0, %c1_i32 : i32
    %4 = arith.extui %3 : i1 to i32
    %c0_i32_1 = arith.constant 0 : i32
    %5 = arith.cmpi ne, %4, %c0_i32_1 : i32
    scf.if %5 {
      %c0_i32_2 = arith.constant 0 : i32
      %6 = arith.cmpi eq, %arg1, %c0_i32_2 : i32
      %7 = arith.extui %6 : i1 to i32
      %c0_i32_3 = arith.constant 0 : i32
      %8 = arith.cmpi ne, %7, %c0_i32_3 : i32
      scf.if %8 {
        %c0_11 = arith.constant 0 : index
        %c0_12 = arith.constant 0 : index
        %16 = vector.load %arg10[%c0_11, %c0_12] : memref<1x50xf32, #tpu.memory_space<vmem>>, vector<1x50xf32>
        %cst_13 = arith.constant 1.562500e-02 : f32
        %17 = vector.broadcast %cst_13 : f32 to vector<1x50xf32>
        %18 = arith.mulf %16, %17 : vector<1x50xf32>
        %c0_14 = arith.constant 0 : index
        %c0_15 = arith.constant 0 : index
        %19 = vector.load %arg11[%c0_14, %c0_15] : memref<1x50xf32, #tpu.memory_space<vmem>>, vector<1x50xf32>
        %cst_16 = arith.constant 1.562500e-02 : f32
        %20 = vector.broadcast %cst_16 : f32 to vector<1x50xf32>
        %21 = arith.mulf %19, %20 : vector<1x50xf32>
        %22 = arith.mulf %18, %18 : vector<1x50xf32>
        %23 = arith.subf %21, %22 : vector<1x50xf32>
        %cst_17 = arith.constant 0.000000e+00 : f32
        %24 = vector.broadcast %cst_17 : f32 to vector<1x50xf32>
        %25 = arith.maximumf %23, %24 : vector<1x50xf32>
        %cst_18 = arith.constant 9.99999974E-6 : f32
        %26 = vector.broadcast %cst_18 : f32 to vector<1x50xf32>
        %27 = arith.addf %25, %26 : vector<1x50xf32>
        %28 = math.rsqrt %27 : vector<1x50xf32>
        %c0_19 = arith.constant 0 : index
        %c0_20 = arith.constant 0 : index
        %29 = vector.load %arg5[%c0_19, %c0_20] : memref<1x50xf32, #tpu.memory_space<vmem>>, vector<1x50xf32>
        %30 = arith.mulf %28, %29 : vector<1x50xf32>
        %c0_21 = arith.constant 0 : index
        %c0_22 = arith.constant 0 : index
        %31 = vector.load %arg6[%c0_21, %c0_22] : memref<1x50xf32, #tpu.memory_space<vmem>>, vector<1x50xf32>
        %32 = arith.mulf %18, %30 : vector<1x50xf32>
        %33 = arith.subf %31, %32 : vector<1x50xf32>
        %c0_23 = arith.constant 0 : index
        %c0_24 = arith.constant 0 : index
        %34 = vector.load %arg3[%c0_23, %c0_24] : memref<5x50xf32, #tpu.memory_space<vmem>>, vector<5x50xf32>
        %35 = vector.broadcast %30 : vector<1x50xf32> to vector<5x50xf32>
        %36 = arith.mulf %34, %35 : vector<5x50xf32>
        %c0_25 = arith.constant 0 : index
        %c0_26 = arith.constant 0 : index
        %37 = vector.load %arg7[%c0_25, %c0_26] : memref<50x2xf32, #tpu.memory_space<vmem>>, vector<50x2xf32>
        %cst_27 = arith.constant dense<0.000000e+00> : vector<5x2xf32>
        %38 = tpu.matmul %36, %37, %cst_27 {dimension_numbers = #tpu.dot_dimension_numbers<[1], [0], [0], [1], [0, 0, 1, 1], [], []>} : vector<5x50xf32>, vector<50x2xf32>, vector<5x2xf32> -> vector<5x2xf32>
        %c0_28 = arith.constant 0 : index
        %c0_29 = arith.constant 0 : index
        %39 = vector.load %arg12[%c0_28, %c0_29] : memref<5x2xf32, #tpu.memory_space<vmem>>, vector<5x2xf32>
        tpu.vector_store %arg12[%c0_28, %c0_29], %38 {strides = array<i32>} : memref<5x2xf32, #tpu.memory_space<vmem>>, vector<5x2xf32>,
        %c0_30 = arith.constant 0 : index
        %c0_31 = arith.constant 0 : index
        %40 = vector.load %arg4[%c0_30, %c0_31] : memref<1x50xf32, #tpu.memory_space<vmem>>, vector<1x50xf32>
        %41 = arith.mulf %40, %30 : vector<1x50xf32>
        %42 = arith.addf %41, %33 : vector<1x50xf32>
        %c0_32 = arith.constant 0 : index
        %c0_33 = arith.constant 0 : index
        %43 = vector.load %arg7[%c0_32, %c0_33] : memref<50x2xf32, #tpu.memory_space<vmem>>, vector<50x2xf32>
        %cst_34 = arith.constant dense<0.000000e+00> : vector<1x2xf32>
        %44 = tpu.matmul %42, %43, %cst_34 {dimension_numbers = #tpu.dot_dimension_numbers<[1], [0], [0], [1], [0, 0, 1, 1], [], []>} : vector<1x50xf32>, vector<50x2xf32>, vector<1x2xf32> -> vector<1x2xf32>
        %c0_35 = arith.constant 0 : index
        %c0_36 = arith.constant 0 : index
        %45 = vector.load %arg8[%c0_35, %c0_36] : memref<1x2xf32, #tpu.memory_space<vmem>>, vector<1x2xf32>
        %46 = arith.addf %44, %45 : vector<1x2xf32>
        %c0_37 = arith.constant 0 : index
        %c0_38 = arith.constant 0 : index
        %47 = vector.load %arg13[%c0_37, %c0_38] : memref<1x2xf32, #tpu.memory_space<vmem>>, vector<1x2xf32>
        tpu.vector_store %arg13[%c0_37, %c0_38], %46 {strides = array<i32>} : memref<1x2xf32, #tpu.memory_space<vmem>>, vector<1x2xf32>,
      } else {
      }
      %c0 = arith.constant 0 : index
      %c0_4 = arith.constant 0 : index
      %9 = vector.load %arg2[%c0, %c0_4] : memref<16x5xf32, #tpu.memory_space<vmem>>, vector<16x5xf32>
      %c0_5 = arith.constant 0 : index
      %c0_6 = arith.constant 0 : index
      %10 = vector.load %arg12[%c0_5, %c0_6] : memref<5x2xf32, #tpu.memory_space<vmem>>, vector<5x2xf32>
      %cst = arith.constant dense<0.000000e+00> : vector<16x2xf32>
      %11 = tpu.matmul %9, %10, %cst {dimension_numbers = #tpu.dot_dimension_numbers<[1], [0], [0], [1], [0, 0, 1, 1], [], []>} : vector<16x5xf32>, vector<5x2xf32>, vector<16x2xf32> -> vector<16x2xf32>
      %c0_7 = arith.constant 0 : index
      %c0_8 = arith.constant 0 : index
      %12 = vector.load %arg13[%c0_7, %c0_8] : memref<1x2xf32, #tpu.memory_space<vmem>>, vector<1x2xf32>
      %13 = vector.broadcast %12 : vector<1x2xf32> to vector<16x2xf32>
      %14 = arith.addf %11, %13 : vector<16x2xf32>
      %c0_9 = arith.constant 0 : index
      %c0_10 = arith.constant 0 : index
      %15 = vector.load %arg9[%c0_9, %c0_10] : memref<16x2xf32, #tpu.memory_space<vmem>>, vector<16x2xf32>
      tpu.vector_store %arg9[%c0_9, %c0_10], %14 {strides = array<i32>} : memref<16x2xf32, #tpu.memory_space<vmem>>, vector<16x2xf32>,
    } else {
    }
    return
  }
  func.func @transform_0(%arg0: i32, %arg1: i32) -> (i32, i32) {
    %c0_i32 = arith.constant 0 : i32
    %c0_i32_0 = arith.constant 0 : i32
    return %arg1, %c0_i32 : i32, i32
  }
  func.func @transform_1(%arg0: i32, %arg1: i32) -> (i32, i32) {
    %c0_i32 = arith.constant 0 : i32
    %c0_i32_0 = arith.constant 0 : i32
    %c0_i32_1 = arith.constant 0 : i32
    return %c0_i32, %c0_i32_0 : i32, i32
  }
  func.func @transform_2(%arg0: i32, %arg1: i32) -> (i32, i32) {
    %c0_i32 = arith.constant 0 : i32
    %c0_i32_0 = arith.constant 0 : i32
    %c0_i32_1 = arith.constant 0 : i32
    return %c0_i32, %c0_i32_0 : i32, i32
  }
  func.func @transform_3(%arg0: i32, %arg1: i32) -> (i32, i32) {
    %c0_i32 = arith.constant 0 : i32
    %c0_i32_0 = arith.constant 0 : i32
    %c0_i32_1 = arith.constant 0 : i32
    return %c0_i32, %c0_i32_0 : i32, i32
  }
  func.func @transform_4(%arg0: i32, %arg1: i32) -> (i32, i32) {
    %c0_i32 = arith.constant 0 : i32
    %c0_i32_0 = arith.constant 0 : i32
    %c0_i32_1 = arith.constant 0 : i32
    return %c0_i32, %c0_i32_0 : i32, i32
  }
  func.func @transform_5(%arg0: i32, %arg1: i32) -> (i32, i32) {
    %c0_i32 = arith.constant 0 : i32
    %c0_i32_0 = arith.constant 0 : i32
    %c0_i32_1 = arith.constant 0 : i32
    return %c0_i32, %c0_i32_0 : i32, i32
  }
  func.func @transform_6(%arg0: i32, %arg1: i32) -> (i32, i32) {
    %c0_i32 = arith.constant 0 : i32
    %c0_i32_0 = arith.constant 0 : i32
    %c0_i32_1 = arith.constant 0 : i32
    return %c0_i32, %c0_i32_0 : i32, i32
  }
  func.func @transform_7(%arg0: i32, %arg1: i32) -> (i32, i32) {
    %0 = arith.muli %arg0, %arg1 : i32
    %c0_i32 = arith.constant 0 : i32
    %c0_i32_0 = arith.constant 0 : i32
    return %0, %c0_i32 : i32, i32
  }
}

</mosaic_0001>

<bundles_post_ra>
// kernel: tpu_custom_call.1
= control target key start
LH: loop header
LB: loop body
LE: loop exit
PB: predicated region body
PF: predicated region fallthrough
CT: control target
= control target key end

     0   :  { %s759_s24 = smov 0   ;;  %s761_s25 = smov 0   ;;  %s876_s0 = inlined_call_operand.vmem [shape: f32[64,5], index: 0, kind: input, shape index: {}]   ;;  %s877_s1 = inlined_call_operand.vmem [shape: f32[5,50], index: 1, kind: input, shape index: {}]   ;;  %s878_s2 = inlined_call_operand.vmem [shape: f32[1,50], index: 2, kind: input, shape index: {}]   ;;  %s879_s3 = inlined_call_operand.vmem [shape: f32[1,50], index: 3, kind: input, shape index: {}]   ;;  %s880_s4 = inlined_call_operand.vmem [shape: f32[1,50], index: 4, kind: input, shape index: {}]   ;;  %s881_s5 = inlined_call_operand.vmem [shape: f32[50,2], index: 5, kind: input, shape index: {}]   ;;  %s882_s6 = inlined_call_operand.vmem [shape: f32[1,2], index: 6, kind: input, shape index: {}]   ;;  %s883_s7 = inlined_call_operand.vmem [shape: f32[64,2], index: 7, kind: output, shape index: {}]  }
   0x1   :  { %s763_s26 = smov 0   ;;  %s765_s27 = smov 0  }
   0x2   :  { %s767_s28 = smov 0  }
   0x3 LB: > { %s26_s29 = sadd.s32 1, %s708_s26  ;;  %s29_s30 = sadd.s32 1, %s712_s27  ;;  %s716_s28 = sphi %s767_s28, %s17_s28   ;;  %s712_s27 = sphi %s765_s27, %s887_s27   ;;  %s708_s26 = sphi %s763_s26, %s886_s26   ;;  %s704_s25 = sphi %s761_s25, %s885_s25   ;;  %s700_s24 = sphi %s759_s24, %s884_s24  }
   0x4   : > { %p27_p0 = scmp.ge.s32.totalorder %s26_s29, 4  ;;  %p610_p1 = scmp.ge.s32.totalorder %s716_s28, 1 }
   0x5   : > { %p252_p2 = scmp.lt.s32.totalorder %s716_s28, 9 }
   0x6   : > { %s889_s29 = smov (%p27_p0, %s26_s29), 0  ;;  %s891_s30 = smov (!%p27_p0, %s29_s30), %s712_s27 }
   0x7   : > { %p253_p3 = pnand %p610_p1, %p252_p2  ;;  %p31_p4 = scmp.ge.s32.totalorder %s891_s30, 2 }
   0x8   : > { %s611_s8 = sshll.u32 (!%p253_p3), %s700_s24, 1  ;;  %s291_s9 = smul.u32 (!%p253_p3), %s700_s24, %s704_s25 }
   0x9   : > { %s893_s30 = smov (%p31_p4, %s891_s30), 0  ;;  %256 = sbr.rel (%p253_p3) target bundleno = 493 (0x1ed), region = 48 }
   0xa   : > { %p286_p5 = scmp.lt.s32.totalorder (!%p253_p3), %s611_s8, 7  ;;  %s613_s10 = sshll.u32 (!%p253_p3), %s291_s9, 1 }
   0xb   : > { %p293_p6 = scmp.lt.s32.totalorder (!%p253_p3), %s613_s10, 7  ;;  %p615_p7 = scmp.ne.s32.totalorder (!%p253_p3), %s704_s25, 0 }
   0xe   : > { %s895_s8 = smov (!%p286_p5, %s611_s8), 7  ;;  %s897_s10 = smov (!%p293_p6, %s613_s10), 7 }
   0xf   : > { %s612_s11 = sshll.u32 %s895_s8, 3  ;;  %s614_s15 = sshll.u32 %s897_s10, 3 }
  0x10   : > { %s799_s14 = scalar_lea.vmem %s876_s0, %s612_s11  ;;  %s804_s18 = scalar_lea.vmem %s883_s7, %s614_s15 }
  0x11   : > { %302 = sbr.rel (%p615_p7) target bundleno = 180 (0xb4), region = 52  ;;  %p616_p8 = scmp.ne.s32.totalorder (!%p615_p7), %s700_s24, 0 }
  0x16   : > { %306 = sbr.rel (%p616_p8) target bundleno = 30 (0x1e), region = 56 }
  0x1b   : > { %vm307_vm0 = vcmask 401408   ;;  %v718_v0 = vmov 0.0  }
  0x1c   : > { %308 = vst.msk [vmem:[#allocation2] sm:$0x1] %vm307_vm0, %v718_v0 }
  0x1d   : > { %309 = vst.msk [vmem:[#allocation3] sm:$0x1] %vm307_vm0, %v718_v0 }
  0x1e PF: > { %v312_v1 = vld [vmem:[%s877_s1] sm:$0x1f]  ;;  %vm324_vm1 = vcmask 1044480   ;;  %vm317_vm2 = vcmask 39936   ;;  %v311_v3 = vld [vmem:[%s799_s14 + $0x8] sm:$0xff]  ;;  %vm352_vm3 = vcmask 408576  }
  0x1f   : > { %v310_v2 = vld [vmem:[%s799_s14] sm:$0xff]  ;;  %617 = vmatpush.msk.msra.mxu0 %vm324_vm1, %v312_v1  ;;  %631 = vmatpush.msk.msra.mxu1 %vm324_vm1, %v312_v1  ;;  %vm363_vm4 = vcmask 401408  }
  0x20   : > { %618 = vmatmul.msk.f32.vlgmr.msra.gmra.mxu0 %vm317_vm2, %v310_v2  ;;  %619 = vmatmul.msk.f32.vlgmr.msra.gmra.mxu1 %vm317_vm2, %v311_v3  ;;  %v674_v4 = vld [vmem:[%s878_s2] ss:$0 sm:$0xff] }
  0x23   : > { %v351_v26 = vld [vmem:[#allocation2] sm:$0x1] }
  0x24   : > { %v365_v29 = vld [vmem:[#allocation3] sm:$0x1] }
  0x9d   : > { %v345_v5 = vpop.f32.mrf.mxu0  ;;  %v348_v6 = vpop.f32.mrf.mxu1 }
  0x9e   : > { %v346_v7 = vadd.f32 %v674_v4, %v345_v5  ;;  %v349_v8 = vadd.f32 %v674_v4, %v348_v6 }
  0xa0   : > { %v353_v9 = vsel %vm352_vm3, %v346_v7, 0.0  ;;  %v366_v10 = vmul.f32 %v346_v7, %v346_v7  ;;  %v354_v11 = vsel %vm352_vm3, %v349_v8, 0.0  ;;  %v367_v12 = vmul.f32 %v349_v8, %v349_v8 }
  0xa1   : > { %v355_v13 = vadd.f32 %v354_v11, %v353_v9 }
  0xa2   : > { %v368_v14 = vsel %vm352_vm3, %v366_v10, 0.0  ;;  %v369_v15 = vsel %vm352_vm3, %v367_v12, 0.0 }
  0xa3   : > { %v356_v16 = vrot.slane %v355_v13, 4  ;;  %v370_v17 = vadd.f32 %v369_v15, %v368_v14 }
  0xa5   : > { %v357_v18 = vadd.f32 %v356_v16, %v355_v13  ;;  %v371_v19 = vrot.slane %v370_v17, 4 }
  0xa7   : > { %v358_v20 = vrot.slane %v357_v18, 2  ;;  %v372_v21 = vadd.f32 %v371_v19, %v370_v17 }
  0xa9   : > { %v359_v22 = vadd.f32 %v358_v20, %v357_v18  ;;  %v373_v23 = vrot.slane %v372_v21, 2 }
  0xab   : > { %v360_v24 = vrot.slane %v359_v22, 1  ;;  %v374_v25 = vadd.f32 %v373_v23, %v372_v21 }
  0xad   : > { %v361_v27 = vadd.f32 %v360_v24, %v359_v22  ;;  %v375_v28 = vrot.slane %v374_v25, 1 }
  0xaf   : > { %v362_v30 = vadd.f32 %v361_v27, %v351_v26  ;;  %v376_v31 = vadd.f32 %v375_v28, %v374_v25 }
  0xb1   : > { %364 = vst.msk [vmem:[#allocation2] sm:$0x1] %vm363_vm4, %v362_v30  ;;  %v377_v32 = vadd.f32 %v376_v31, %v365_v29 }
  0xb3   : > { %378 = vst.msk [vmem:[#allocation3] sm:$0x1] %vm363_vm4, %v377_v32 }
  0xb4 PF: > { %p620_p9 = scmp.ne.s32.totalorder %s704_s25, 1 }
  0xb5   : > { %p621_p10 = scmp.ne.s32.totalorder (!%p620_p9), %s700_s24, 0 }
  0xb6   : > { %382 = sbr.rel (%p620_p9) target bundleno = 493 (0x1ed), region = 60 }
  0xbb   : > { %386 = sbr.rel (%p621_p10) target bundleno = 359 (0x167), region = 64 }
  0xc0   : > { %vm426_vm5 = vcmask 1041408   ;;  %v461_v33 = vld [vmem:[%s881_s5 + $0x30] sm:$0x3]  ;;  %v460_v35 = vld [vmem:[%s881_s5 + $0x28] sm:$0xff]  ;;  %v459_v36 = vld [vmem:[%s881_s5 + $0x20] sm:$0xff]  ;;  %vm422_vm9 = vcmask 408576  }
  0xc1   : > { %v421_v34 = vld [vmem:[%s881_s5 + $0x30] sm:$0x3]  ;;  %624 = vmatpush.msk.msra.mxu1 %vm426_vm5, %v461_v33  ;;  %v387_v37 = vld [vmem:[#allocation2] sm:$0x1]  ;;  %v389_v39 = vld [vmem:[#allocation3] sm:$0x1] }
  0xc2   : > { %622 = vmatpush.msk.msra.mxu0 %vm426_vm5, %v421_v34  ;;  %v388_v38 = vmul.f32 0.015625, %v387_v37  ;;  %v458_v40 = vld [vmem:[%s881_s5 + $0x18] sm:$0xff]  ;;  %v390_v41 = vmul.f32 0.015625, %v389_v39  ;;  %v457_v43 = vld [vmem:[%s881_s5 + $0x10] sm:$0xff]  ;;  %v456_v45 = vld [vmem:[%s881_s5 + $0x8] sm:$0xff]  ;;  %vm450_vm10 = vcmask 12288  }
  0xc3   : > { %479 = vmatpush.msra.mxu1 %v460_v35  ;;  %v455_v47 = vld [vmem:[%s881_s5] sm:$0xff]  ;;  %vm489_vm11 = vcmask 8192  }
  0xc4   : > { %440 = vmatpush.msra.mxu0 %v460_v35  ;;  %v391_v42 = vmul.f32 %v388_v38, %v388_v38  ;;  %v405_v55 = vld [vmem:[%s879_s3] sm:$0x1] }
  0xc5   : > { %480 = vmatpush.msra.mxu1 %v459_v36  ;;  %v452_v57 = vld [vmem:[%s878_s2] sm:$0x1] }
  0xc6   : > { %441 = vmatpush.msra.mxu0 %v459_v36  ;;  %v392_v44 = vsub.f32 %v390_v41, %v391_v42  ;;  %v407_v59 = vld [vmem:[%s880_s4] sm:$0x1] }
  0xc7   : > { %481 = vmatpush.msra.mxu1 %v458_v40  ;;  %v410_v60 = vld [vmem:[%s877_s1] sm:$0x1f] }
  0xc8   : > { %442 = vmatpush.msra.mxu0 %v458_v40  ;;  %v393_v46 = vmax.f32 %v392_v44, 0.0  ;;  %v462_v3 = vld [vmem:[%s882_s6] sm:$0x1] }
  0xc9   : > { %482 = vmatpush.msra.mxu1 %v457_v43 }
  0xca   : > { %443 = vmatpush.msra.mxu0 %v457_v43  ;;  %v394_v48 = vadd.f32 1e-05, %v393_v46 }
  0xcb   : > { %483 = vmatpush.msra.mxu1 %v456_v45 }
  0xcc   : > { %444 = vmatpush.msra.mxu0 %v456_v45  ;;  %675 = vrsqrt.f32 %v394_v48  ;;  %vm401_vm6 = vweird.f32 %v394_v48 }
  0xcd   : > { %484 = vmatpush.msra.mxu1 %v455_v47 }
  0xce   : > { %445 = vmatpush.msra.mxu0 %v455_v47 }
  0xd2   : > { %v676_v49 = vpop.eup %675 }
  0xd3   : > { %v396_v50 = vmul.f32 %v676_v49, %v394_v48  ;;  %vm402_vm7 = vweird.f32 %v676_v49 }
  0xd4   : > { %vm403_vm8 = vmor %vm401_vm6, %vm402_vm7 }
  0xd5   : > { %v397_v51 = vmul.f32 %v676_v49, %v396_v50 }
  0xd7   : > { %v398_v52 = vmul.f32 0.5, %v397_v51 }
  0xd9   : > { %v399_v53 = vsub.f32 1.5, %v398_v52 }
  0xdb   : > { %v400_v54 = vmul.f32 %v676_v49, %v399_v53 }
  0xdd   : > { %v404_v56 = vsel %vm403_vm8, %v676_v49, %v400_v54 }
  0xde   : > { %v406_v58 = vmul.f32 %v405_v55, %v404_v56 }
  0xe0   : > { %v408_v61 = vmul.f32 %v406_v58, %v388_v38  ;;  %v453_v62 = vmul.f32 %v452_v57, %v406_v58  ;;  %v412_v63 = vperm.slane %v406_v58, 0 }
  0xe2   : > { %v409_v0 = vsub.f32 %v407_v59, %v408_v61  ;;  %v414_v1 = vmul.f32 %v412_v63, %v410_v60 }
  0xe4   : > { %v454_v2 = vadd.f32 %v453_v62, %v409_v0  ;;  %623 = vmatmul.msk.f32.vlgmr.msra.gmra.mxu0 %vm422_vm9, %v414_v1 }
  0xe6   : > { %625 = vmatmul.msk.f32.vlgmr.msra.gmra.mxu1 %vm422_vm9, %v454_v2 }
 0x161   : > { %v447_v4 = vpop.f32.mrf.mxu0 }
 0x162   : > { %451 = vst.msk [vmem:[#allocation4] sm:$0x1f] %vm450_vm10, %v447_v4 }
 0x163   : > { %v486_v5 = vpop.f32.mrf.mxu1 }
 0x164   : > { %v487_v6 = vadd.f32 %v486_v5, %v462_v3 }
 0x166   : > { %490 = vst.msk [vmem:[#allocation5] sm:$0x1] %vm489_vm11, %v487_v6 }
 0x167 PF: > { %vm505_vm12 = vcmask 1044480   ;;  %v491_v8 = vld [vmem:[%s799_s14] sm:$0xff]  ;;  %vm498_vm13 = vcmask 39936   ;;  %v492_v9 = vld [vmem:[%s799_s14 + $0x8] sm:$0xff]  ;;  %vm532_vm14 = vcmask 15360  }
 0x169   : > { %v493_v7 = vld [vmem:[#allocation4] sm:$0x1f] }
 0x16a   : > { %626 = vmatpush.msk.msra.mxu0 %vm505_vm12, %v493_v7  ;;  %632 = vmatpush.msk.msra.mxu1 %vm505_vm12, %v493_v7 }
 0x16b   : > { %627 = vmatmul.msk.f32.vlgmr.msra.gmra.mxu0 %vm498_vm13, %v491_v8  ;;  %628 = vmatmul.msk.f32.vlgmr.msra.gmra.mxu1 %vm498_vm13, %v492_v9 }
 0x16d   : > { %v677_v10 = vld [vmem:[#allocation5] ss:$0 sm:$0xff] }
 0x1e8   : > { %v526_v11 = vpop.f32.mrf.mxu0  ;;  %v529_v12 = vpop.f32.mrf.mxu1 }
 0x1e9   : > { %v527_v13 = vadd.f32 %v677_v10, %v526_v11  ;;  %v530_v14 = vadd.f32 %v677_v10, %v529_v12 }
 0x1eb   : > { %533 = vst.msk [vmem:[%s804_s18] sm:$0xff] %vm532_vm14, %v527_v13 }
 0x1ec   : > { %534 = vst.msk [vmem:[%s804_s18 + $0x8] sm:$0xff] %vm532_vm14, %v530_v14 }
 0x1ed PF: > { %s17_s28 = sadd.s32 1, %s716_s28   ;;  %s884_s24 = smov %s708_s26 }
 0x1ee   : > { %p14_p11 = scmp.ge.s32.totalorder %s17_s28, 10   ;;  %s885_s25 = smov %s712_s27 }
 0x1ef   : > { %s886_s26 = smov %s889_s29  ;;  %s887_s27 = smov %s893_s30 }
 0x1f0   :  { %16 = sbr.rel (!%p14_p11) target bundleno = 3 (0x3), region = 94 }

</bundles_post_ra>
